<compile_context>
chip_gen: v7x
topology: tpu7x:2x2x1
jax: 0.10.0
libtpu: 0.0.40
codegen_flags: <defaults>
</compile_context>

<pallas_src>
import functools

import jax
import jax.numpy as jnp
import numpy as np
from jax.experimental import pallas as pl
from jax.experimental.pallas import tpu as pltpu


def _log_sigmoid(z):
    # logsigmoid(z) = min(z, 0) - log1p(exp(-|z|)): one exp + one log1p,
    # no dual-branch jnp.where.
    return jnp.minimum(z, 0.0) - jnp.log1p(jnp.exp(-jnp.abs(z)))


def _bivariate_kernel(x_ref, p_ref, s_ref, out_ref, *, n, h):
    """Fused BivariateStructuralModel forward.

    x_ref  : [N, 2]   VMEM  bivariate samples, columns (A, B)
    p_ref  : [8, 128] VMEM  packed MLP params (lanes 0:2H live):
               row 0 -> W1[0, :]   (model_A_B | model_B_A concatenated)
               row 1 -> W1[1, :]
               row 2 -> b1
               row 3 -> W2^T (output weights as a row)
    s_ref  : [3]      SMEM  (b2_AB, b2_BA, w)
    out_ref: [1, 1]   VMEM  scalar mixture log-likelihood
    """
    h2 = 2 * h
    x = x_ref[...]                       # [N, 2]
    xa = x[:, 0:1]                       # [N, 1]
    xb = x[:, 1:2]                       # [N, 1]

    w1r0 = p_ref[0:1, 0:h2]              # [1, 2H]
    w1r1 = p_ref[1:2, 0:h2]              # [1, 2H]
    b1 = p_ref[2:3, 0:h2]                # [1, 2H]
    w2t = p_ref[3:4, 0:h2]               # [1, 2H]

    # Both sub-MLP hidden layers fused: VPU multiply-add + EUP tanh (no MXU).
    hidden = jnp.tanh(xa * w1r0 + xb * w1r1 + b1)        # [N, 2H]
    prod = hidden * w2t                                  # [N, 2H]

    # Second layer + per-model sum: one sublane reduce, then two lane reduces.
    col = jnp.sum(prod, axis=0, keepdims=True)           # [1, 2H]
    sum_ab = jnp.sum(col[:, 0:h], axis=1, keepdims=True)      # [1, 1]
    sum_ba = jnp.sum(col[:, h:h2], axis=1, keepdims=True)     # [1, 1]

    # Hoisted output biases: sum(h @ W2 + b2) == sum(h * W2^T) + N * b2.
    b2ab = jnp.full((1, 1), s_ref[0], jnp.float32)
    b2ba = jnp.full((1, 1), s_ref[1], jnp.float32)
    w = jnp.full((1, 1), s_ref[2], jnp.float32)
    sum_ab = sum_ab + np.float32(n) * b2ab
    sum_ba = sum_ba + np.float32(n) * b2ba

    # logsumexp( logsigmoid(w) + sum_ab, logsigmoid(-w) + sum_ba )
    a = _log_sigmoid(w) + sum_ab
    b = _log_sigmoid(-w) + sum_ba
    m = jnp.maximum(a, b)
    out_ref[...] = m + jnp.log(jnp.exp(a - m) + jnp.exp(b - m))


def bivariate_structural_forward(x, params):
    """x: [N, 2] f32. params: 9-tuple mirroring the PyTorch module's tensors."""
    (w1ab, b1ab, w2ab, b2ab, w1ba, b1ba, w2ba, b2ba, w) = params
    n, d = x.shape
    h = w1ab.shape[1]
    h2 = 2 * h
    assert d == 2, "bivariate model expects exactly 2 input features (A, B)"
    assert h2 <= 128, "packed layout assumes 2*H fits in one 128-lane row"

    # Pack every weight tensor into a single padded [8, 128] f32 slab
    # (one DMA).  For a real model this packing would be done once per
    # parameter update, not per forward call.
    packed = jnp.zeros((8, 128), jnp.float32)
    packed = packed.at[0:2, 0:h2].set(jnp.concatenate([w1ab, w1ba], axis=1))
    packed = packed.at[2, 0:h2].set(jnp.concatenate([b1ab, b1ba], axis=1)[0])
    packed = packed.at[3, 0:h2].set(jnp.concatenate([w2ab.T, w2ba.T], axis=1)[0])

    # True scalars ride in SMEM.
    scalars = jnp.stack([b2ab[0, 0], b2ba[0, 0], w[0, 0]]).astype(jnp.float32)

    kernel = functools.partial(_bivariate_kernel, n=n, h=h)
    out = pl.pallas_call(
        kernel,
        out_shape=jax.ShapeDtypeStruct((1, 1), jnp.float32),
        in_specs=[
            pl.BlockSpec(memory_space=pltpu.MemorySpace.VMEM),   # x
            pl.BlockSpec(memory_space=pltpu.MemorySpace.VMEM),   # packed weights
            pl.BlockSpec(memory_space=pltpu.MemorySpace.SMEM),   # scalars
        ],
        out_specs=pl.BlockSpec(memory_space=pltpu.MemorySpace.VMEM),
    )(x, packed, scalars)
    return out[0, 0]


def _reference_forward(x, params):
    (w1ab, b1ab, w2ab, b2ab, w1ba, b1ba, w2ba, b2ba, w) = params
    hi = jax.lax.Precision.HIGHEST

    def mlp_sum(w1, b1, w2, b2):
        h = jnp.tanh(jnp.dot(x, w1, precision=hi) + b1)
        return jnp.sum(jnp.dot(h, w2, precision=hi) + b2)

    sum_ab = mlp_sum(w1ab, b1ab, w2ab, b2ab)
    sum_ba = mlp_sum(w1ba, b1ba, w2ba, b2ba)
    wv = w[0, 0]
    a = jax.nn.log_sigmoid(wv) + sum_ab
    b = jax.nn.log_sigmoid(-wv) + sum_ba
    return jnp.logaddexp(a, b)


def _init_params(key, d, h):
    ks = jax.random.split(key, 8)
    scale1 = 1.0 / np.sqrt(d)
    scale2 = 1.0 / np.sqrt(h)
    w1ab = jax.random.normal(ks[0], (d, h), jnp.float32) * scale1
    b1ab = jax.random.normal(ks[1], (1, h), jnp.float32) * 0.1
    w2ab = jax.random.normal(ks[2], (h, 1), jnp.float32) * scale2
    b2ab = jax.random.normal(ks[3], (1, 1), jnp.float32) * 0.1
    w1ba = jax.random.normal(ks[4], (d, h), jnp.float32) * scale1
    b1ba = jax.random.normal(ks[5], (1, h), jnp.float32) * 0.1
    w2ba = jax.random.normal(ks[6], (h, 1), jnp.float32) * scale2
    b2ba = jax.random.normal(ks[7], (1, 1), jnp.float32) * 0.1
    # structural parameter: nn.Parameter(torch.tensor(0.0))
    w = jnp.zeros((1, 1), jnp.float32)
    return (w1ab, b1ab, w2ab, b2ab, w1ba, b1ba, w2ba, b2ba, w)


if __name__ == "__main__":
    N, D, H = 8, 2, 32   # seq=8 bivariate samples, hidden=32
    key = jax.random.PRNGKey(0)
    k_x, k_p = jax.random.split(key)
    x = jax.random.normal(k_x, (N, D), jnp.float32)
    params = _init_params(k_p, D, H)

    out = jax.block_until_ready(bivariate_structural_forward(x, params))
    ref = _reference_forward(x, params)
    assert np.allclose(np.asarray(out), np.asarray(ref), rtol=1e-4, atol=1e-4), (out, ref)

    print("KERNEL_OK")
</pallas_src>

<mosaic_0001>
module attributes {stable_mosaic.version = 11 : i64} {
  func.func @_bivariate_kernel(%arg0: memref<8x2xf32, #tpu.memory_space<vmem>>, %arg1: memref<8x128xf32, #tpu.memory_space<vmem>>, %arg2: memref<3xf32, #tpu.memory_space<smem>>, %arg3: memref<1x1xf32, #tpu.memory_space<vmem>>) attributes {dimension_semantics = [], scalar_prefetch = 0 : i64, scratch_operands = 0 : i64, tpu.core_type = #tpu.core_type<tc>} {
    %c0 = arith.constant 0 : index
    %c0_0 = arith.constant 0 : index
    %0 = vector.load %arg0[%c0, %c0_0] : memref<8x2xf32, #tpu.memory_space<vmem>>, vector<8x2xf32>
    %1 = vector.extract_strided_slice %0 {offsets = [0, 0], sizes = [8, 1], strides = [1, 1]} : vector<8x2xf32> to vector<8x1xf32>
    %2 = vector.extract_strided_slice %0 {offsets = [0, 1], sizes = [8, 1], strides = [1, 1]} : vector<8x2xf32> to vector<8x1xf32>
    %c0_1 = arith.constant 0 : index
    %c0_2 = arith.constant 0 : index
    %3 = vector.load %arg1[%c0_1, %c0_2] : memref<8x128xf32, #tpu.memory_space<vmem>>, vector<1x64xf32>
    %c1 = arith.constant 1 : index
    %c0_3 = arith.constant 0 : index
    %4 = vector.load %arg1[%c1, %c0_3] : memref<8x128xf32, #tpu.memory_space<vmem>>, vector<1x64xf32>
    %c2 = arith.constant 2 : index
    %c0_4 = arith.constant 0 : index
    %5 = vector.load %arg1[%c2, %c0_4] : memref<8x128xf32, #tpu.memory_space<vmem>>, vector<1x64xf32>
    %c3 = arith.constant 3 : index
    %c0_5 = arith.constant 0 : index
    %6 = vector.load %arg1[%c3, %c0_5] : memref<8x128xf32, #tpu.memory_space<vmem>>, vector<1x64xf32>
    %7 = vector.broadcast %1 : vector<8x1xf32> to vector<8x64xf32>
    %8 = vector.broadcast %3 : vector<1x64xf32> to vector<8x64xf32>
    %9 = arith.mulf %7, %8 : vector<8x64xf32>
    %10 = vector.broadcast %2 : vector<8x1xf32> to vector<8x64xf32>
    %11 = vector.broadcast %4 : vector<1x64xf32> to vector<8x64xf32>
    %12 = arith.mulf %10, %11 : vector<8x64xf32>
    %13 = arith.addf %9, %12 : vector<8x64xf32>
    %14 = vector.broadcast %5 : vector<1x64xf32> to vector<8x64xf32>
    %15 = arith.addf %13, %14 : vector<8x64xf32>
    %16 = math.tanh %15 : vector<8x64xf32>
    %17 = vector.broadcast %6 : vector<1x64xf32> to vector<8x64xf32>
    %18 = arith.mulf %16, %17 : vector<8x64xf32>
    %cst = arith.constant dense<0.000000e+00> : vector<64xf32>
    %19 = vector.multi_reduction <add>, %18, %cst [0] : vector<8x64xf32> to vector<64xf32>
    %20 = vector.shape_cast %19 : vector<64xf32> to vector<1x64xf32>
    %21 = vector.extract_strided_slice %20 {offsets = [0, 0], sizes = [1, 32], strides = [1, 1]} : vector<1x64xf32> to vector<1x32xf32>
    %cst_6 = arith.constant dense<0.000000e+00> : vector<1xf32>
    %22 = vector.multi_reduction <add>, %21, %cst_6 [1] : vector<1x32xf32> to vector<1xf32>
    %23 = vector.shape_cast %22 : vector<1xf32> to vector<1x1xf32>
    %24 = vector.extract_strided_slice %20 {offsets = [0, 32], sizes = [1, 32], strides = [1, 1]} : vector<1x64xf32> to vector<1x32xf32>
    %cst_7 = arith.constant dense<0.000000e+00> : vector<1xf32>
    %25 = vector.multi_reduction <add>, %24, %cst_7 [1] : vector<1x32xf32> to vector<1xf32>
    %26 = vector.shape_cast %25 : vector<1xf32> to vector<1x1xf32>
    %c0_8 = arith.constant 0 : index
    %27 = memref.load %arg2[%c0_8] : memref<3xf32, #tpu.memory_space<smem>>
    %28 = vector.broadcast %27 : f32 to vector<1x1xf32>
    %c1_9 = arith.constant 1 : index
    %29 = memref.load %arg2[%c1_9] : memref<3xf32, #tpu.memory_space<smem>>
    %30 = vector.broadcast %29 : f32 to vector<1x1xf32>
    %c2_10 = arith.constant 2 : index
    %31 = memref.load %arg2[%c2_10] : memref<3xf32, #tpu.memory_space<smem>>
    %32 = vector.broadcast %31 : f32 to vector<1x1xf32>
    %cst_11 = arith.constant 8.000000e+00 : f32
    %33 = vector.broadcast %cst_11 : f32 to vector<1x1xf32>
    %34 = arith.mulf %33, %28 : vector<1x1xf32>
    %35 = arith.addf %23, %34 : vector<1x1xf32>
    %cst_12 = arith.constant 8.000000e+00 : f32
    %36 = vector.broadcast %cst_12 : f32 to vector<1x1xf32>
    %37 = arith.mulf %36, %30 : vector<1x1xf32>
    %38 = arith.addf %26, %37 : vector<1x1xf32>
    %cst_13 = arith.constant 0.000000e+00 : f32
    %39 = vector.broadcast %cst_13 : f32 to vector<1x1xf32>
    %40 = arith.minimumf %32, %39 : vector<1x1xf32>
    %41 = math.absf %32 : vector<1x1xf32>
    %cst_14 = arith.constant 0.000000e+00 : f32
    %42 = vector.broadcast %cst_14 : f32 to vector<1x1xf32>
    %43 = arith.subf %42, %41 : vector<1x1xf32>
    %44 = math.exp %43 : vector<1x1xf32>
    %45 = math.log1p %44 : vector<1x1xf32>
    %46 = arith.subf %40, %45 : vector<1x1xf32>
    %47 = arith.addf %46, %35 : vector<1x1xf32>
    %cst_15 = arith.constant 0.000000e+00 : f32
    %48 = vector.broadcast %cst_15 : f32 to vector<1x1xf32>
    %49 = arith.subf %48, %32 : vector<1x1xf32>
    %cst_16 = arith.constant 0.000000e+00 : f32
    %50 = vector.broadcast %cst_16 : f32 to vector<1x1xf32>
    %51 = arith.minimumf %49, %50 : vector<1x1xf32>
    %52 = math.absf %49 : vector<1x1xf32>
    %cst_17 = arith.constant 0.000000e+00 : f32
    %53 = vector.broadcast %cst_17 : f32 to vector<1x1xf32>
    %54 = arith.subf %53, %52 : vector<1x1xf32>
    %55 = math.exp %54 : vector<1x1xf32>
    %56 = math.log1p %55 : vector<1x1xf32>
    %57 = arith.subf %51, %56 : vector<1x1xf32>
    %58 = arith.addf %57, %38 : vector<1x1xf32>
    %59 = arith.maximumf %47, %58 : vector<1x1xf32>
    %60 = arith.subf %47, %59 : vector<1x1xf32>
    %61 = math.exp %60 : vector<1x1xf32>
    %62 = arith.subf %58, %59 : vector<1x1xf32>
    %63 = math.exp %62 : vector<1x1xf32>
    %64 = arith.addf %61, %63 : vector<1x1xf32>
    %65 = math.log %64 : vector<1x1xf32>
    %66 = arith.addf %59, %65 : vector<1x1xf32>
    %c0_18 = arith.constant 0 : index
    %c0_19 = arith.constant 0 : index
    %67 = vector.load %arg3[%c0_18, %c0_19] : memref<1x1xf32, #tpu.memory_space<vmem>>, vector<1x1xf32>
    tpu.vector_store %arg3[%c0_18, %c0_19], %66 {strides = array<i32>} : memref<1x1xf32, #tpu.memory_space<vmem>>, vector<1x1xf32>,
    return
  }
}

</mosaic_0001>

<bundles_post_ra>
// kernel: tpu_custom_call.1
= control target key start
LH: loop header
LB: loop body
LE: loop exit
PB: predicated region body
PF: predicated region fallthrough
CT: control target
= control target key end

     0   :  { %8 = vsyncpa [#allocation4], 0  ;;  %s276_s0 = inlined_call_operand.vmem [shape: f32[8,2], index: 0, kind: input, shape index: {}]   ;;  %s277_s1 = inlined_call_operand.vmem [shape: f32[8,128], index: 1, kind: input, shape index: {}]   ;;  %s278_s2 = inlined_call_operand.vmem [shape: f32[3], index: 2, kind: input, shape index: {}]   ;;  %s279_s3 = inlined_call_operand.hbm [shape: f32[1,1], index: 3, kind: output, shape index: {}]  }
   0x1   :  { %9 = vsyncpa [#allocation3], 0  ;;  %s20_s14 = sshll.u32 %s278_s2, 4  ;;  %s21_s14 = int_to_ptr.vmem [resolvable:$true] %s20_s14 }
   0x2   :  { %s183_s15 = scalar_lea.vmem %s21_s14, 16  ;;  %p188_p1 = scmp.lt.s32.totalorder %s21_s14, %s21_s14 }
   0x3   :  { %p184_p0 = scmp.ne.s32.totalorder %s21_s14, %s183_s15  ;;  %p189_p2 = scmp.lt.s32.totalorder %s183_s15, %s183_s15 }
   0x5   :  { %p190_p3 = por %p189_p2, %p188_p1 }
   0x7   :  { %p191_p4 = pnand %p190_p3, %p184_p0 }
   0x9   :  { %194 = shalt.err (!%p191_p4)
}
   0xa   :  { %s221_s16 = smov [#allocation2]  }
   0xb   :  { %23 = dma.vmem_to_smem %s21_s14, 16, %s221_s16, [#allocation4]  }
   0xc   :  { %217 = dma.done.wait [#allocation4], 16  }
   0xd   :  { %218 = vsyncadd [#allocation4], 4294967280 }
   0xe   :  { %27 = sfence }
   0xf   :  { %v28_v0 = vld [vmem:[%s276_s0] sm:$0xff]  ;;  %v222_v1 = vmov 0   ;;  %v223_v2 = vmov 1   ;;  %vm64_vm0 = vcmask 523264   ;;  %s224_s25 = smov 96   ;;  %vm72_vm1 = vcmask 261120  }
  0x10   :  { %165 = vset.pattern.permute.xlu0 %v222_v1  ;;  %v154_v4 = vld [vmem:[%s277_s1] ss:$0 sm:$0xff]  ;;  %v155_v5 = vld [vmem:[%s277_s1 + $0x1] ss:$0 sm:$0xff]  ;;  %v156_v9 = vld [vmem:[%s277_s1 + $0x2] ss:$0 sm:$0xff] }
  0x11   :  { %35 = vperm.xlu0 %165, %v28_v0   ;;  %v157_v12 = vld [vmem:[%s277_s1 + $0x3] ss:$0 sm:$0xff]  ;;  %s159_s26 = sld [smem:[#allocation2 + $0x2]]  ;;  %s83_s1 = sld [smem:[#allocation2]]  ;;  %vm137_vm4 = vcmask 0  }
  0x12   :  { %s158_s27 = sld [smem:[#allocation2 + $0x1]]  ;;  %s225_s28 = smov [#allocation5]  }
  0x13   :  { %s145_s29 = sshll.u32 %s225_s28, 4  ;;  %s146_s29 = int_to_ptr.vmem [resolvable:$true] %s145_s29 }
  0x14   :  { %s195_s30 = scalar_lea.vmem %s146_s29, 16  ;;  %s199_s4 = scalar_lea.vmem %s146_s29, 32 }
  0x15   :  { %166 = vset.pattern.permute.xlu0 %v223_v2  ;;  %p196_p5 = scmp.ne.s32.totalorder %s146_s29, %s195_s30  ;;  %p200_p6 = scmp.lt.s32.totalorder %s146_s29, %s146_s29 }
  0x16   :  { %44 = vperm.xlu0 %166, %v28_v0   ;;  %p201_p7 = scmp.lt.s32.totalorder %s199_s4, %s195_s30 }
  0x17   :  { %v88_v25 = vstv %s159_s26  ;;  %v84_v45 = vstv %s83_s1 }
  0x18   :  { %v109_v26 = vsub.f32 0.0, %v88_v25  ;;  %v94_v27 = vand.u32 2147483647, %v88_v25  ;;  %v86_v50 = vstv %s158_s27  ;;  %v89_v51 = vmul.f32 8.0, %v84_v45  ;;  %p202_p8 = por %p201_p7, %p200_p6 }
  0x19   :  { %v93_v52 = vmin.f32 %v88_v25, 0.0  ;;  %v91_v57 = vmul.f32 8.0, %v86_v50 }
  0x1a   :  { %v111_v28 = vand.u32 2147483647, %v109_v26  ;;  %v95_v29 = vsub.f32 0.0, %v94_v27  ;;  %v110_v53 = vmin.f32 %v109_v26, 0.0  ;;  %p203_p9 = pnand %p202_p8, %p196_p5 }
  0x1c   :  { %v112_v30 = vsub.f32 0.0, %v111_v28  ;;  %v96_v31 = vmul.f32 1.442695, %v95_v29 }
  0x1e   :  { %v113_v32 = vmul.f32 1.442695, %v112_v30 }
  0x90   :  { %v36_v3 = vpop.permute.xlu0 %35 }
  0x91   :  { %v42_v7 = vmul.f32 %v154_v4, %v36_v3 }
  0x95   :  { %v45_v6 = vpop.permute.xlu0 %44 }
  0x96   :  { %v51_v8 = vmul.f32 %v155_v5, %v45_v6 }
  0x98   :  { %v52_v10 = vadd.f32 %v51_v8, %v42_v7 }
  0x9a   :  { %v57_v11 = vadd.f32 %v156_v9, %v52_v10 }
  0x9c   :  { %167 = vtanh.f32 %v57_v11 }
  0x9d   :  { %169 = vpow2.f32 %v96_v31 }
  0x9e   :  { %171 = vpow2.f32 %v113_v32 }
  0xa6   :  { %v168_v13 = vpop.eup %167 }
  0xa7   :  { %v63_v14 = vmul.f32 %v168_v13, %v157_v12  ;;  %v170_v33 = vpop.eup %169 }
  0xa8   :  { %v172_v34 = vpop.eup %171  ;;  %v98_v35 = vadd.f32 1.0, %v170_v33  ;;  %v101_v37 = vmul.f32 -0.5, %v170_v33  ;;  %v104_v43 = vand.u32 2147483647, %v170_v33 }
  0xa9   :  { %v65_v15 = vsel %vm64_vm0, %v63_v14, 0.0  ;;  %v115_v36 = vadd.f32 1.0, %v172_v34  ;;  %v118_v38 = vmul.f32 -0.5, %v172_v34  ;;  %v121_v44 = vand.u32 2147483647, %v172_v34 }
  0xaa   :  { %v66_v16 = vrot.slane %v65_v15, 4  ;;  %173 = vlog2.f32 %v98_v35  ;;  %v102_v40 = vadd.f32 1.0, %v101_v37  ;;  %vm105_vm2 = vcmp.lt.f32.partialorder %v104_v43, 0.0004427343 }
  0xab   :  { %175 = vlog2.f32 %v115_v36  ;;  %v119_v41 = vadd.f32 1.0, %v118_v38  ;;  %vm122_vm3 = vcmp.lt.f32.partialorder %v121_v44, 0.0004427343 }
  0xac   :  { %v67_v17 = vadd.f32 %v66_v16, %v65_v15  ;;  %v103_v47 = vmul.f32 %v170_v33, %v102_v40 }
  0xad   :  { %v120_v49 = vmul.f32 %v172_v34, %v119_v41 }
  0xae   :  { %v68_v18 = vrot.slane %v67_v17, 2 }
  0xb0   :  { %v69_v19 = vadd.f32 %v68_v18, %v67_v17 }
  0xb2   :  { %v70_v20 = vrot.slane %v69_v19, 1 }
  0xb4   :  { %v71_v21 = vadd.f32 %v70_v20, %v69_v19  ;;  %v174_v39 = vpop.eup %173 }
  0xb5   :  { %v176_v42 = vpop.eup %175  ;;  %v100_v46 = vmul.f32 0.6931472, %v174_v39 }
  0xb6   :  { %77 = vrot.lane.b32.xlu1 %v71_v21, %s224_s25  ;;  %v73_v22 = vsel %vm72_vm1, %v71_v21, 0.0  ;;  %v117_v48 = vmul.f32 0.6931472, %v176_v42 }
  0xb7   :  { %v106_v54 = vsel %vm105_vm2, %v103_v47, %v100_v46 }
  0xb8   :  { %v123_v56 = vsel %vm122_vm3, %v120_v49, %v117_v48  ;;  %v107_v58 = vsub.f32 %v93_v52, %v106_v54 }
  0xb9   :  { %v124_v60 = vsub.f32 %v110_v53, %v123_v56 }
  0xda   :  { %74 = vadd.xlane.f32.xlu1 %v73_v22 }
 0x128   :  { %v78_v23 = vpop.permute.xlu1 %77 }
 0x129   :  { %v80_v24 = vsel %vm72_vm1, %v78_v23, 0.0 }
 0x12a   :  { %81 = vadd.xlane.f32.xlu0 %v80_v24 }
 0x167   :  { %v75_v55 = vpop.xlane.xlu1 %74 }
 0x168   :  { %v90_v59 = vadd.f32 %v89_v51, %v75_v55 }
 0x16a   :  { %v108_v63 = vadd.f32 %v107_v58, %v90_v59 }
 0x1b7   :  { %v82_v61 = vpop.xlane.xlu0 %81 }
 0x1b8   :  { %v92_v62 = vadd.f32 %v91_v57, %v82_v61 }
 0x1ba   :  { %v125_v0 = vadd.f32 %v124_v60, %v92_v62 }
 0x1bc   :  { %v126_v1 = vmax.f32 %v108_v63, %v125_v0 }
 0x1be   :  { %v127_v2 = vsub.f32 %v108_v63, %v126_v1  ;;  %v130_v3 = vsub.f32 %v125_v0, %v126_v1 }
 0x1c0   :  { %v128_v4 = vmul.f32 1.442695, %v127_v2  ;;  %v131_v5 = vmul.f32 1.442695, %v130_v3 }
 0x1c2   :  { %177 = vpow2.f32 %v128_v4 }
 0x1c3   :  { %179 = vpow2.f32 %v131_v5 }
 0x1cc   :  { %v178_v6 = vpop.eup %177 }
 0x1cd   :  { %v180_v7 = vpop.eup %179 }
 0x1ce   :  { %v133_v8 = vadd.f32 %v180_v7, %v178_v6 }
 0x1d0   :  { %181 = vlog2.f32 %v133_v8 }
 0x1da   :  { %v182_v9 = vpop.eup %181 }
 0x1db   :  { %v135_v10 = vmul.f32 0.6931472, %v182_v9 }
 0x1dd   :  { %v136_v11 = vadd.f32 %v135_v10, %v126_v1 }
 0x1df   :  { %138 = vst.msk [vmem:[#allocation5] sm:$0x1] %vm137_vm4, %v136_v11 }
 0x1e0   :  { %206 = shalt.err (!%p203_p9)
}
 0x1e1   :  { %s207_s7 = scalar_lea.hbm %s279_s3, 16 }
 0x1e2   :  { %p208_p10 = scmp.ne.s32.totalorder %s279_s3, %s207_s7  ;;  %p211_p11 = scmp.lt.u32.totalorder %s207_s7, %s279_s3 }
 0x1e4   :  { %p213_p12 = pnand %p211_p11, %p208_p10 }
 0x1e6   :  { %216 = shalt.err (!%p213_p12)
}
 0x1e7   :  { %148 = dma.vmem_to_hbm [thread:$0]  %s146_s29, 16, %s279_s3, [#allocation3]  }
 0x1e8   :  { %219 = dma.done.wait [#allocation3], 16  }
 0x1e9   :  { %220 = vsyncadd [#allocation3], 4294967280 }
 0x1ea   :  { %152 = vsyncpa [#allocation3], 1 }
 0x1eb   :  { %153 = vsyncpa [#allocation4], 1 }

</bundles_post_ra>
